<compile_context>
chip_gen: v7x
topology: tpu7x:2x2x1
jax: 0.10.0
libtpu: 0.0.40
codegen_flags: <defaults>
</compile_context>

<pallas_src>
import math

import jax
import jax.numpy as jnp
from jax.experimental import pallas as pl
from jax.experimental.pallas import tpu as pltpu


# ---------------------------------------------------------------------------
# Host-side helpers
# ---------------------------------------------------------------------------
def _subsample_indices(t: int, num_samples: int):
    """Temporal indices matching pytorchvideo.uniform_temporal_subsample.

    torch: linspace(0, t-1, num_samples).clamp(0, t-1).long(). Computed here
    with exact integer floor; can differ from torch's float32 arithmetic by
    +-1 frame only at rare float32 rounding boundaries.
    """
    if num_samples == 1:
        return [0]
    out = []
    for i in range(num_samples):
        v = (i * (t - 1)) // (num_samples - 1)
        out.append(int(min(t - 1, max(0, v))))
    return out


def _choose_lane_layout(hw: int, max_lane: int = 2048):
    """Pick a lane dim L (divisor of H*W) maximizing 128-lane utilization.

    The kernel is a pure temporal gather, so spatial axes can be regrouped
    freely: (H, W) -> (hw // L, L). A multiple of 128 gives fully unmasked
    stores; otherwise pick the divisor with best lane efficiency.
    Returns (L, S) with S = hw // L.
    """
    best_l, best_eff = 1, 0.0
    for cand in range(min(hw, max_lane), 0, -1):
        if hw % cand:
            continue
        eff = cand / (128.0 * math.ceil(cand / 128.0))
        if eff > best_eff + 1e-12:
            best_l, best_eff = cand, eff
            if eff >= 1.0:
                break
    return best_l, hw // best_l


def _vmem_capacity_bytes() -> int:
    """Physical per-core VMEM; conservative fallback if query unavailable."""
    try:
        return int(pltpu.get_tpu_info().vmem_capacity_bytes)
    except Exception:
        return 64 * 1024 * 1024  # v7x per-TC VMEM (smallest current gen)


# ---------------------------------------------------------------------------
# Kernels
# ---------------------------------------------------------------------------
def _copy_kernel(idx_ref, x_ref, o_ref):
    # x_ref / o_ref are (C, 1, chunk, L) VMEM tiles: the temporally-selected
    # frame chunk (all channels). The gather lives in the scalar-prefetch
    # driven index_map; the body is a pure copy.
    del idx_ref
    o_ref[...] = x_ref[...]


def _make_tiny_kernel(indices):
    """Single-step kernel: whole video resident in VMEM, static unrolled gather."""
    indices = tuple(int(i) for i in indices)

    def kernel(x_ref, o_ref):
        for s, t in enumerate(indices):
            o_ref[:, s : s + 1, :, :] = x_ref[:, t : t + 1, :, :]

    return kernel


# ---------------------------------------------------------------------------
# Public wrapper
# ---------------------------------------------------------------------------
def uniform_temporal_subsample(x: jax.Array, num_samples: int) -> jax.Array:
    """Pallas implementation of pytorchvideo uniform_temporal_subsample.

    Args:
      x: video array of shape (C, T, H, W).
      num_samples: number of temporal samples to select.

    Returns:
      Array of shape (C, num_samples, H, W), same dtype as x.
    """
    C, T, H, W = x.shape
    itemsize = jnp.dtype(x.dtype).itemsize
    indices = _subsample_indices(T, num_samples)

    HW = H * W
    L, S = _choose_lane_layout(HW)
    x_r = x.reshape(C, T, S, L)

    vmem_cap = _vmem_capacity_bytes()

    in_bytes = C * T * HW * itemsize
    out_bytes = C * num_samples * HW * itemsize
    total_bytes = in_bytes + out_bytes

    # --------------------- Tiny-input fast path ---------------------------
    # Whole input + output fit comfortably in VMEM -> one grid step, gather
    # unrolled with static indices (removes all per-step overhead).
    tiny_budget = min(4 << 20, max(vmem_cap // 8, 1 << 20))
    if total_bytes <= tiny_budget and num_samples <= 128:
        out = pl.pallas_call(
            _make_tiny_kernel(indices),
            out_shape=jax.ShapeDtypeStruct((C, num_samples, S, L), x.dtype),
            grid=(1,),
            in_specs=[pl.BlockSpec((C, T, S, L), lambda i: (0, 0, 0, 0))],
            out_specs=pl.BlockSpec((C, num_samples, S, L), lambda i: (0, 0, 0, 0)),
            cost_estimate=pl.CostEstimate(
                flops=0, transcendentals=0, bytes_accessed=total_bytes),
        )(x_r)
        return out.reshape(C, num_samples, H, W)

    # --------------------- Tiled gather path -------------------------------
    # Native sublane multiple per dtype (packed dtypes tile as 16/32 sublanes).
    sublane = {1: 32, 2: 16}.get(itemsize, 8)

    # ~2 MiB blocks saturate the HBM roofline for streaming copies and keep
    # double-buffered in+out inside the default scoped VMEM on every
    # generation (including v7x's 64 MiB/TC).
    block_budget = max(min(2 << 20, vmem_cap // 16), 1)
    row_bytes = C * L * itemsize
    max_rows = max(1, block_budget // row_bytes)
    if max_rows >= S:
        chunk = S
    elif max_rows >= sublane:
        chunk = (max_rows // sublane) * sublane
    else:
        chunk = min(sublane, S)
    n_chunks = -(-S // chunk)  # ragged last chunk handled by Pallas masking

    block_bytes = C * chunk * L * itemsize
    compiler_kwargs = {}
    needed = 4 * block_bytes + (2 << 20)  # in + out, double-buffered, + slack
    if needed > (16 << 20):               # smallest default scoped-VMEM (v5e)
        compiler_kwargs["vmem_limit_bytes"] = int(min(needed, vmem_cap))

    idx_arr = jnp.asarray(indices, dtype=jnp.int32)

    if num_samples > T:
        # Oversampling: duplicate temporal indices. Sample axis innermost so
        # consecutive steps revisit the same input block -> Pallas skips the
        # redundant input DMA.
        grid = (n_chunks, num_samples)
        in_map = lambda h, s, idx: (0, idx[s], h, 0)
        out_map = lambda h, s, idx: (0, s, h, 0)
    else:
        grid = (num_samples, n_chunks)
        in_map = lambda s, h, idx: (0, idx[s], h, 0)
        out_map = lambda s, h, idx: (0, s, h, 0)

    grid_spec = pltpu.PrefetchScalarGridSpec(
        num_scalar_prefetch=1,
        grid=grid,
        in_specs=[pl.BlockSpec((C, 1, chunk, L), in_map)],
        out_specs=pl.BlockSpec((C, 1, chunk, L), out_map),
    )

    # TODO(synk): for very large frames a direct HBM->HBM DMA gather
    # (memory_space=pl.ANY + make_async_copy ring) would skip VMEM staging
    # entirely; the BlockSpec path below already runs at the copy roofline.
    out = pl.pallas_call(
        _copy_kernel,
        out_shape=jax.ShapeDtypeStruct((C, num_samples, S, L), x.dtype),
        grid_spec=grid_spec,
        compiler_params=pltpu.CompilerParams(
            dimension_semantics=("parallel", "parallel"),
            **compiler_kwargs,
        ),
        cost_estimate=pl.CostEstimate(
            flops=0, transcendentals=0, bytes_accessed=2 * out_bytes),
    )(idx_arr, x_r)

    return out.reshape(C, num_samples, H, W)


# ---------------------------------------------------------------------------
# Self-test
# ---------------------------------------------------------------------------
if __name__ == "__main__":
    key = jax.random.PRNGKey(0)

    def check(x, num_samples):
        out = jax.block_until_ready(uniform_temporal_subsample(x, num_samples))
        ref_idx = jnp.asarray(
            _subsample_indices(x.shape[1], num_samples), jnp.int32)
        ref = jnp.take(x, ref_idx, axis=1)
        assert out.shape == ref.shape, (out.shape, ref.shape)
        assert out.dtype == x.dtype
        assert bool(jnp.array_equal(out, ref))

    k1, k2, k3 = jax.random.split(key, 3)

    # 1) Small, spec-consistent input -> tiny single-step fast path.
    x1 = jax.random.normal(k1, (4, 16, 16, 16), dtype=jnp.float32)
    check(x1, 8)

    # 2) Odd spatial size (H*W not a multiple of 128) -> lane-layout fallback.
    x2 = jax.random.normal(k2, (2, 10, 7, 9), dtype=jnp.float32)
    check(x2, 4)

    # 3) Larger frames + oversampling (num_samples > T) -> tiled
    #    scalar-prefetch gather path with ragged spatial chunks and
    #    sample-innermost grid (input-DMA revisit skip).
    x3 = jax.random.normal(k3, (3, 6, 448, 448), dtype=jnp.float32)
    check(x3, 16)

    print("KERNEL_OK")
</pallas_src>

<mosaic_0001>
module attributes {stable_mosaic.version = 11 : i64} {
  func.func @kernel(%arg0: i32, %arg1: memref<4x16x1x256xf32, #tpu.memory_space<vmem>>, %arg2: memref<4x8x1x256xf32, #tpu.memory_space<vmem>>) attributes {dimension_semantics = [#tpu.dimension_semantics<arbitrary>], iteration_bounds = array<i64: 1>, scalar_prefetch = 0 : i64, scratch_operands = 0 : i64, tpu.core_type = #tpu.core_type<tc>, window_params = [{pipeline_mode = #tpu.pipeline_mode<synchronous>, transform_indices = @transform_0, window_bounds = array<i64: 4, 16, 1, 256>}, {pipeline_mode = #tpu.pipeline_mode<synchronous>, transform_indices = @transform_1, window_bounds = array<i64: 4, 8, 1, 256>}]} {
    %c0 = arith.constant 0 : index
    %c0_0 = arith.constant 0 : index
    %c0_1 = arith.constant 0 : index
    %c0_2 = arith.constant 0 : index
    %0 = vector.load %arg1[%c0, %c0_0, %c0_1, %c0_2] : memref<4x16x1x256xf32, #tpu.memory_space<vmem>>, vector<4x1x1x256xf32>
    %c0_3 = arith.constant 0 : index
    %c0_4 = arith.constant 0 : index
    %c0_5 = arith.constant 0 : index
    %c0_6 = arith.constant 0 : index
    %1 = vector.load %arg2[%c0_3, %c0_4, %c0_5, %c0_6] : memref<4x8x1x256xf32, #tpu.memory_space<vmem>>, vector<4x1x1x256xf32>
    tpu.vector_store %arg2[%c0_3, %c0_4, %c0_5, %c0_6], %0 {strides = array<i32>} : memref<4x8x1x256xf32, #tpu.memory_space<vmem>>, vector<4x1x1x256xf32>,
    %c0_7 = arith.constant 0 : index
    %c2 = arith.constant 2 : index
    %c0_8 = arith.constant 0 : index
    %c0_9 = arith.constant 0 : index
    %2 = vector.load %arg1[%c0_7, %c2, %c0_8, %c0_9] : memref<4x16x1x256xf32, #tpu.memory_space<vmem>>, vector<4x1x1x256xf32>
    %c0_10 = arith.constant 0 : index
    %c1 = arith.constant 1 : index
    %c0_11 = arith.constant 0 : index
    %c0_12 = arith.constant 0 : index
    %3 = vector.load %arg2[%c0_10, %c1, %c0_11, %c0_12] : memref<4x8x1x256xf32, #tpu.memory_space<vmem>>, vector<4x1x1x256xf32>
    tpu.vector_store %arg2[%c0_10, %c1, %c0_11, %c0_12], %2 {strides = array<i32>} : memref<4x8x1x256xf32, #tpu.memory_space<vmem>>, vector<4x1x1x256xf32>,
    %c0_13 = arith.constant 0 : index
    %c4 = arith.constant 4 : index
    %c0_14 = arith.constant 0 : index
    %c0_15 = arith.constant 0 : index
    %4 = vector.load %arg1[%c0_13, %c4, %c0_14, %c0_15] : memref<4x16x1x256xf32, #tpu.memory_space<vmem>>, vector<4x1x1x256xf32>
    %c0_16 = arith.constant 0 : index
    %c2_17 = arith.constant 2 : index
    %c0_18 = arith.constant 0 : index
    %c0_19 = arith.constant 0 : index
    %5 = vector.load %arg2[%c0_16, %c2_17, %c0_18, %c0_19] : memref<4x8x1x256xf32, #tpu.memory_space<vmem>>, vector<4x1x1x256xf32>
    tpu.vector_store %arg2[%c0_16, %c2_17, %c0_18, %c0_19], %4 {strides = array<i32>} : memref<4x8x1x256xf32, #tpu.memory_space<vmem>>, vector<4x1x1x256xf32>,
    %c0_20 = arith.constant 0 : index
    %c6 = arith.constant 6 : index
    %c0_21 = arith.constant 0 : index
    %c0_22 = arith.constant 0 : index
    %6 = vector.load %arg1[%c0_20, %c6, %c0_21, %c0_22] : memref<4x16x1x256xf32, #tpu.memory_space<vmem>>, vector<4x1x1x256xf32>
    %c0_23 = arith.constant 0 : index
    %c3 = arith.constant 3 : index
    %c0_24 = arith.constant 0 : index
    %c0_25 = arith.constant 0 : index
    %7 = vector.load %arg2[%c0_23, %c3, %c0_24, %c0_25] : memref<4x8x1x256xf32, #tpu.memory_space<vmem>>, vector<4x1x1x256xf32>
    tpu.vector_store %arg2[%c0_23, %c3, %c0_24, %c0_25], %6 {strides = array<i32>} : memref<4x8x1x256xf32, #tpu.memory_space<vmem>>, vector<4x1x1x256xf32>,
    %c0_26 = arith.constant 0 : index
    %c8 = arith.constant 8 : index
    %c0_27 = arith.constant 0 : index
    %c0_28 = arith.constant 0 : index
    %8 = vector.load %arg1[%c0_26, %c8, %c0_27, %c0_28] : memref<4x16x1x256xf32, #tpu.memory_space<vmem>>, vector<4x1x1x256xf32>
    %c0_29 = arith.constant 0 : index
    %c4_30 = arith.constant 4 : index
    %c0_31 = arith.constant 0 : index
    %c0_32 = arith.constant 0 : index
    %9 = vector.load %arg2[%c0_29, %c4_30, %c0_31, %c0_32] : memref<4x8x1x256xf32, #tpu.memory_space<vmem>>, vector<4x1x1x256xf32>
    tpu.vector_store %arg2[%c0_29, %c4_30, %c0_31, %c0_32], %8 {strides = array<i32>} : memref<4x8x1x256xf32, #tpu.memory_space<vmem>>, vector<4x1x1x256xf32>,
    %c0_33 = arith.constant 0 : index
    %c10 = arith.constant 10 : index
    %c0_34 = arith.constant 0 : index
    %c0_35 = arith.constant 0 : index
    %10 = vector.load %arg1[%c0_33, %c10, %c0_34, %c0_35] : memref<4x16x1x256xf32, #tpu.memory_space<vmem>>, vector<4x1x1x256xf32>
    %c0_36 = arith.constant 0 : index
    %c5 = arith.constant 5 : index
    %c0_37 = arith.constant 0 : index
    %c0_38 = arith.constant 0 : index
    %11 = vector.load %arg2[%c0_36, %c5, %c0_37, %c0_38] : memref<4x8x1x256xf32, #tpu.memory_space<vmem>>, vector<4x1x1x256xf32>
    tpu.vector_store %arg2[%c0_36, %c5, %c0_37, %c0_38], %10 {strides = array<i32>} : memref<4x8x1x256xf32, #tpu.memory_space<vmem>>, vector<4x1x1x256xf32>,
    %c0_39 = arith.constant 0 : index
    %c12 = arith.constant 12 : index
    %c0_40 = arith.constant 0 : index
    %c0_41 = arith.constant 0 : index
    %12 = vector.load %arg1[%c0_39, %c12, %c0_40, %c0_41] : memref<4x16x1x256xf32, #tpu.memory_space<vmem>>, vector<4x1x1x256xf32>
    %c0_42 = arith.constant 0 : index
    %c6_43 = arith.constant 6 : index
    %c0_44 = arith.constant 0 : index
    %c0_45 = arith.constant 0 : index
    %13 = vector.load %arg2[%c0_42, %c6_43, %c0_44, %c0_45] : memref<4x8x1x256xf32, #tpu.memory_space<vmem>>, vector<4x1x1x256xf32>
    tpu.vector_store %arg2[%c0_42, %c6_43, %c0_44, %c0_45], %12 {strides = array<i32>} : memref<4x8x1x256xf32, #tpu.memory_space<vmem>>, vector<4x1x1x256xf32>,
    %c0_46 = arith.constant 0 : index
    %c15 = arith.constant 15 : index
    %c0_47 = arith.constant 0 : index
    %c0_48 = arith.constant 0 : index
    %14 = vector.load %arg1[%c0_46, %c15, %c0_47, %c0_48] : memref<4x16x1x256xf32, #tpu.memory_space<vmem>>, vector<4x1x1x256xf32>
    %c0_49 = arith.constant 0 : index
    %c7 = arith.constant 7 : index
    %c0_50 = arith.constant 0 : index
    %c0_51 = arith.constant 0 : index
    %15 = vector.load %arg2[%c0_49, %c7, %c0_50, %c0_51] : memref<4x8x1x256xf32, #tpu.memory_space<vmem>>, vector<4x1x1x256xf32>
    tpu.vector_store %arg2[%c0_49, %c7, %c0_50, %c0_51], %14 {strides = array<i32>} : memref<4x8x1x256xf32, #tpu.memory_space<vmem>>, vector<4x1x1x256xf32>,
    return
  }
  func.func @transform_0(%arg0: i32) -> (i32, i32, i32, i32) {
    %c0_i32 = arith.constant 0 : i32
    %c0_i32_0 = arith.constant 0 : i32
    %c0_i32_1 = arith.constant 0 : i32
    %c0_i32_2 = arith.constant 0 : i32
    %c0_i32_3 = arith.constant 0 : i32
    return %c0_i32, %c0_i32_0, %c0_i32_1, %c0_i32_2 : i32, i32, i32, i32
  }
  func.func @transform_1(%arg0: i32) -> (i32, i32, i32, i32) {
    %c0_i32 = arith.constant 0 : i32
    %c0_i32_0 = arith.constant 0 : i32
    %c0_i32_1 = arith.constant 0 : i32
    %c0_i32_2 = arith.constant 0 : i32
    %c0_i32_3 = arith.constant 0 : i32
    return %c0_i32, %c0_i32_0, %c0_i32_1, %c0_i32_2 : i32, i32, i32, i32
  }
}

</mosaic_0001>

<bundles_post_ra>
// kernel: tpu_custom_call.1
= control target key start
LH: loop header
LB: loop body
LE: loop exit
PB: predicated region body
PF: predicated region fallthrough
CT: control target
= control target key end

     0   :  { %6 = vsyncpa [#allocation3], 0  ;;  %s289_s0 = inlined_call_operand.hbm [shape: f32[4,16,1,256], index: 0, kind: input, shape index: {}]   ;;  %s290_s1 = inlined_call_operand.hbm [shape: f32[4,8,1,256], index: 1, kind: output, shape index: {}]  }
   0x1   :  { %7 = vsyncpa [#allocation4], 0  ;;  %s174_s6 = smov [#allocation2]   ;;  %s126_s10 = scalar_lea.hbm %s289_s0, 2048 }
   0x2   :  { %s13_s7 = sshll.u32 %s174_s6, 4  ;;  %p127_p0 = scmp.ne.s32.totalorder %s289_s0, %s126_s10  ;;  %s14_s7 = int_to_ptr.vmem [resolvable:$true] %s13_s7 }
   0x3   :  { %p130_p1 = scmp.lt.u32.totalorder %s126_s10, %s289_s0 }
   0x5   :  { %p132_p2 = pnand %p130_p1, %p127_p0 }
   0x7   :  { %135 = shalt.err (!%p132_p2)
}
   0x8   :  { %s136_s15 = scalar_lea.vmem %s14_s7, 2048  ;;  %p141_p4 = scmp.lt.s32.totalorder %s14_s7, %s14_s7 }
   0x9   :  { %p137_p3 = scmp.ne.s32.totalorder %s14_s7, %s136_s15  ;;  %p142_p5 = scmp.lt.s32.totalorder %s136_s15, %s136_s15 }
   0xb   :  { %p143_p6 = por %p142_p5, %p141_p4 }
   0xd   :  { %p144_p7 = pnand %p143_p6, %p137_p3 }
   0xf   :  { %147 = shalt.err (!%p144_p7)
}
  0x10   :  { %s175_s16 = smov 32   ;;  %s176_s17 = smov 2  }
  0x11   :  { %19 = dma.hbm_to_vmem [thread:$0]  %s289_s0, 2048, %s14_s7, [#allocation3], %s175_s16, %s175_s16, %s176_s17  }
  0x12   :  { %170 = dma.done.wait [#allocation3], 2048  }
  0x13   :  { %171 = vsyncadd [#allocation3], 4294965248  ;;  %v27_v0 = vlaneseq  ;;  %s177_s20 = smov [#allocation5]   ;;  %v23_v2 = vld [vmem:[#allocation2] sm:$0x3] }
  0x14   :  { %s207_s21 = sshll.u32 %s177_s20, 4  ;;  %v24_v3 = vld [vmem:[#allocation2 + $0x20] sm:$0x3]  ;;  %v36_v6 = vld [vmem:[#allocation2 + $0x4] sm:$0x3]  ;;  %s111_s21 = int_to_ptr.vmem [resolvable:$true] %s207_s21 }
  0x15   :  { %vm203_vm0 = vcmp.lt.s32.totalorder %v27_v0, 256  ;;  %v25_v4 = vld [vmem:[#allocation2 + $0x40] sm:$0x3]  ;;  %v37_v7 = vld [vmem:[#allocation2 + $0x24] sm:$0x3]  ;;  %s148_s0 = scalar_lea.vmem %s111_s21, 1024  ;;  %p153_p9 = scmp.lt.s32.totalorder %s111_s21, %s111_s21 }
  0x16   :  { %31 = vst.msk [vmem:[#allocation5] sm:$0x3] %vm203_vm0, %v23_v2  ;;  %32 = vst.msk [vmem:[#allocation5 + $0x10] sm:$0x3] %vm203_vm0, %v24_v3  ;;  %v26_v5 = vld [vmem:[#allocation2 + $0x60] sm:$0x3]  ;;  %p149_p8 = scmp.ne.s32.totalorder %s111_s21, %s148_s0  ;;  %p154_p10 = scmp.lt.s32.totalorder %s148_s0, %s148_s0 }
  0x17   :  { %33 = vst.msk [vmem:[#allocation5 + $0x20] sm:$0x3] %vm203_vm0, %v25_v4  ;;  %34 = vst.msk [vmem:[#allocation5 + $0x30] sm:$0x3] %vm203_vm0, %v26_v5  ;;  %v38_v8 = vld [vmem:[#allocation2 + $0x44] sm:$0x3] }
  0x18   :  { %41 = vst.msk [vmem:[#allocation5 + $0x2] sm:$0x3] %vm203_vm0, %v36_v6  ;;  %42 = vst.msk [vmem:[#allocation5 + $0x12] sm:$0x3] %vm203_vm0, %v37_v7  ;;  %v39_v9 = vld [vmem:[#allocation2 + $0x64] sm:$0x3]  ;;  %p155_p11 = por %p154_p10, %p153_p9 }
  0x19   :  { %v46_v10 = vld [vmem:[#allocation2 + $0x8] sm:$0x3]  ;;  %43 = vst.msk [vmem:[#allocation5 + $0x22] sm:$0x3] %vm203_vm0, %v38_v8  ;;  %44 = vst.msk [vmem:[#allocation5 + $0x32] sm:$0x3] %vm203_vm0, %v39_v9 }
  0x1a   :  { %51 = vst.msk [vmem:[#allocation5 + $0x4] sm:$0x3] %vm203_vm0, %v46_v10  ;;  %v47_v11 = vld [vmem:[#allocation2 + $0x28] sm:$0x3]  ;;  %v56_v14 = vld [vmem:[#allocation2 + $0xc] sm:$0x3]  ;;  %p156_p12 = pnand %p155_p11, %p149_p8 }
  0x1b   :  { %v48_v12 = vld [vmem:[#allocation2 + $0x48] sm:$0x3]  ;;  %52 = vst.msk [vmem:[#allocation5 + $0x14] sm:$0x3] %vm203_vm0, %v47_v11  ;;  %v57_v15 = vld [vmem:[#allocation2 + $0x2c] sm:$0x3] }
  0x1c   :  { %v49_v13 = vld [vmem:[#allocation2 + $0x68] sm:$0x3]  ;;  %53 = vst.msk [vmem:[#allocation5 + $0x24] sm:$0x3] %vm203_vm0, %v48_v12  ;;  %v58_v16 = vld [vmem:[#allocation2 + $0x4c] sm:$0x3] }
  0x1d   :  { %54 = vst.msk [vmem:[#allocation5 + $0x34] sm:$0x3] %vm203_vm0, %v49_v13  ;;  %61 = vst.msk [vmem:[#allocation5 + $0x6] sm:$0x3] %vm203_vm0, %v56_v14  ;;  %v59_v17 = vld [vmem:[#allocation2 + $0x6c] sm:$0x3] }
  0x1e   :  { %62 = vst.msk [vmem:[#allocation5 + $0x16] sm:$0x3] %vm203_vm0, %v57_v15  ;;  %63 = vst.msk [vmem:[#allocation5 + $0x26] sm:$0x3] %vm203_vm0, %v58_v16  ;;  %v66_v18 = vld [vmem:[#allocation2 + $0x10] sm:$0x3] }
  0x1f   :  { %v67_v19 = vld [vmem:[#allocation2 + $0x30] sm:$0x3]  ;;  %64 = vst.msk [vmem:[#allocation5 + $0x36] sm:$0x3] %vm203_vm0, %v59_v17  ;;  %71 = vst.msk [vmem:[#allocation5 + $0x8] sm:$0x3] %vm203_vm0, %v66_v18 }
  0x20   :  { %72 = vst.msk [vmem:[#allocation5 + $0x18] sm:$0x3] %vm203_vm0, %v67_v19  ;;  %v68_v20 = vld [vmem:[#allocation2 + $0x50] sm:$0x3]  ;;  %v76_v22 = vld [vmem:[#allocation2 + $0x14] sm:$0x3] }
  0x21   :  { %v69_v21 = vld [vmem:[#allocation2 + $0x70] sm:$0x3]  ;;  %73 = vst.msk [vmem:[#allocation5 + $0x28] sm:$0x3] %vm203_vm0, %v68_v20  ;;  %81 = vst.msk [vmem:[#allocation5 + $0xa] sm:$0x3] %vm203_vm0, %v76_v22 }
  0x22   :  { %74 = vst.msk [vmem:[#allocation5 + $0x38] sm:$0x3] %vm203_vm0, %v69_v21  ;;  %v77_v23 = vld [vmem:[#allocation2 + $0x34] sm:$0x3]  ;;  %v86_v26 = vld [vmem:[#allocation2 + $0x18] sm:$0x3] }
  0x23   :  { %v78_v24 = vld [vmem:[#allocation2 + $0x54] sm:$0x3]  ;;  %82 = vst.msk [vmem:[#allocation5 + $0x1a] sm:$0x3] %vm203_vm0, %v77_v23  ;;  %v87_v27 = vld [vmem:[#allocation2 + $0x38] sm:$0x3] }
  0x24   :  { %v79_v25 = vld [vmem:[#allocation2 + $0x74] sm:$0x3]  ;;  %83 = vst.msk [vmem:[#allocation5 + $0x2a] sm:$0x3] %vm203_vm0, %v78_v24  ;;  %v88_v28 = vld [vmem:[#allocation2 + $0x58] sm:$0x3] }
  0x25   :  { %84 = vst.msk [vmem:[#allocation5 + $0x3a] sm:$0x3] %vm203_vm0, %v79_v25  ;;  %91 = vst.msk [vmem:[#allocation5 + $0xc] sm:$0x3] %vm203_vm0, %v86_v26  ;;  %v89_v29 = vld [vmem:[#allocation2 + $0x78] sm:$0x3] }
  0x26   :  { %92 = vst.msk [vmem:[#allocation5 + $0x1c] sm:$0x3] %vm203_vm0, %v87_v27  ;;  %93 = vst.msk [vmem:[#allocation5 + $0x2c] sm:$0x3] %vm203_vm0, %v88_v28  ;;  %v96_v30 = vld [vmem:[#allocation2 + $0x1e] sm:$0x3] }
  0x27   :  { %v97_v31 = vld [vmem:[#allocation2 + $0x3e] sm:$0x3]  ;;  %94 = vst.msk [vmem:[#allocation5 + $0x3c] sm:$0x3] %vm203_vm0, %v89_v29  ;;  %101 = vst.msk [vmem:[#allocation5 + $0xe] sm:$0x3] %vm203_vm0, %v96_v30 }
  0x28   :  { %102 = vst.msk [vmem:[#allocation5 + $0x1e] sm:$0x3] %vm203_vm0, %v97_v31  ;;  %v98_v32 = vld [vmem:[#allocation2 + $0x5e] sm:$0x3] }
  0x29   :  { %v99_v33 = vld [vmem:[#allocation2 + $0x7e] sm:$0x3]  ;;  %103 = vst.msk [vmem:[#allocation5 + $0x2e] sm:$0x3] %vm203_vm0, %v98_v32 }
  0x2a   :  { %104 = vst.msk [vmem:[#allocation5 + $0x3e] sm:$0x3] %vm203_vm0, %v99_v33 }
  0x2b   :  { %159 = shalt.err (!%p156_p12)
}
  0x2c   :  { %s160_s24 = scalar_lea.hbm %s290_s1, 1024 }
  0x2d   :  { %p161_p13 = scmp.ne.s32.totalorder %s290_s1, %s160_s24  ;;  %p164_p0 = scmp.lt.u32.totalorder %s160_s24, %s290_s1 }
  0x2f   :  { %p166_p1 = pnand %p164_p0, %p161_p13 }
  0x31   :  { %169 = shalt.err (!%p166_p1)
}
  0x32   :  { %116 = dma.vmem_to_hbm [thread:$0]  %s111_s21, 1024, %s290_s1, [#allocation4], %s175_s16, %s175_s16, %s176_s17  }
  0x33   :  { %172 = dma.done.wait [#allocation4], 1024  }
  0x34   :  { %173 = vsyncadd [#allocation4], 4294966272 }
  0x35   :  { %120 = vsyncpa [#allocation3], 1 }
  0x36   :  { %121 = vsyncpa [#allocation4], 1 }

</bundles_post_ra>
